<compile_context>
chip_gen: v6e
topology: v6e:2x2x1
jax: 0.10.0
libtpu: 0.0.40
codegen_flags: <defaults>
</compile_context>

<pallas_src>
import functools

import jax
import jax.numpy as jnp
from jax import lax
from jax.experimental import pallas as pl
from jax.experimental.pallas import tpu as pltpu


# ---------------------------------------------------------------------------
# Fused kernel: QKV proj -> multi-head SDPA (batch-block-diag mask) -> out proj
# ---------------------------------------------------------------------------
def _mha_encoder_kernel(x_ref, wqkv_ref, bqkv_ref, wo_ref, bo_ref, bias_ref,
                        o_ref, *, num_heads, temperature):
    # x_ref:    (BS, Din)   flattened (batch*seq, input_dim)
    # wqkv_ref: (Din, 3E)   columns laid out as [q | k | v], each block head-major
    # bqkv_ref: (1, 3E)
    # wo_ref:   (E, E)      already transposed: o = values @ wo
    # bo_ref:   (1, E)
    # bias_ref: (BS, BS)    block-diagonal additive mask (0 in-batch, -1e30 cross-batch)
    # o_ref:    (BS, E)
    E = wo_ref.shape[0]
    Hd = E // num_heads
    inv_temp = 1.0 / temperature

    x = x_ref[...]
    bias = bias_ref[...]
    wo = wo_ref[...]

    # --- single fused QKV projection on the MXU ---
    qkv = jnp.dot(x, wqkv_ref[...], preferred_element_type=jnp.float32) + bqkv_ref[...]

    # --- per-head attention, output projection distributed over heads ---
    acc = jnp.zeros(o_ref.shape, jnp.float32)
    for h in range(num_heads):
        lo = h * Hd
        qh = qkv[:, lo:lo + Hd]                       # (BS, Hd)
        kh = qkv[:, E + lo:E + lo + Hd]               # (BS, Hd)
        vh = qkv[:, 2 * E + lo:2 * E + lo + Hd]       # (BS, Hd)

        # scores = qh @ kh.T / temperature  + block-diagonal batch mask
        s = lax.dot_general(qh, kh, (((1,), (1,)), ((), ())),
                            preferred_element_type=jnp.float32) * inv_temp + bias
        s = s - jnp.max(s, axis=-1, keepdims=True)    # stable softmax
        p = jnp.exp(s)
        p = p * pl.reciprocal(jnp.sum(p, axis=-1, keepdims=True), approx=False)
        # TODO(synk): training-mode dropout on p not emitted (eval mode -> identity).

        hv = jnp.dot(p, vh, preferred_element_type=jnp.float32)              # (BS, Hd)
        # Row-sliced (sublane-aligned) chunk of Wo; accumulate instead of concatenating.
        acc = acc + jnp.dot(hv, wo[lo:lo + Hd, :], preferred_element_type=jnp.float32)

    o_ref[...] = (acc + bo_ref[...]).astype(o_ref.dtype)


# ---------------------------------------------------------------------------
# One-time weight preparation (hoist out of the per-call path / module init)
# ---------------------------------------------------------------------------
def prepare_params(params, num_heads):
    """Rearrange PyTorch nn.Linear weights once into the kernel's layout."""
    E = params["wo"].shape[0]
    Din = params["wqkv"].shape[1]
    Hd = E // num_heads
    # PyTorch qkv output column index: h*3Hd + t*Hd + d   (t = 0:q, 1:k, 2:v)
    # Kernel wants column index:       t*E   + h*Hd + d   ([q | k | v], head-major)
    w = params["wqkv"].T.reshape(Din, num_heads, 3, Hd)
    wqkv = jnp.transpose(w, (0, 2, 1, 3)).reshape(Din, 3 * E).astype(jnp.float32)
    b = params["bqkv"].reshape(num_heads, 3, Hd)
    bqkv = jnp.transpose(b, (1, 0, 2)).reshape(1, 3 * E).astype(jnp.float32)
    wo = params["wo"].T.astype(jnp.float32)          # (E, E): o = values @ wo + bo
    bo = params["bo"].reshape(1, E).astype(jnp.float32)
    return {"wqkv": wqkv, "bqkv": bqkv, "wo": wo, "bo": bo}


# ---------------------------------------------------------------------------
# Wrapper: (B, S, Din) in, (B, S, E) out
# ---------------------------------------------------------------------------
def multihead_attention_encoder(x, prep, num_heads):
    B, S, Din = x.shape
    E = prep["wo"].shape[0]
    BS = B * S
    temperature = float(E) ** 0.5

    x2 = x.reshape(BS, Din).astype(jnp.float32)
    # Block-diagonal additive bias keeping attention within each batch element.
    seg = jnp.repeat(jnp.arange(B, dtype=jnp.int32), S)
    bias = jnp.where(seg[:, None] == seg[None, :], 0.0, -1e30).astype(jnp.float32)

    kernel = functools.partial(_mha_encoder_kernel,
                               num_heads=num_heads, temperature=temperature)

    out = pl.pallas_call(
        kernel,
        out_shape=jax.ShapeDtypeStruct((BS, E), jnp.float32),
        grid=(1,),
        in_specs=[
            pl.BlockSpec((BS, Din), lambda i: (0, 0)),     # x (flattened)
            pl.BlockSpec((Din, 3 * E), lambda i: (0, 0)),  # wqkv (fused, head-major)
            pl.BlockSpec((1, 3 * E), lambda i: (0, 0)),    # bqkv
            pl.BlockSpec((E, E), lambda i: (0, 0)),        # wo (transposed)
            pl.BlockSpec((1, E), lambda i: (0, 0)),        # bo
            pl.BlockSpec((BS, BS), lambda i: (0, 0)),      # block-diagonal batch bias
        ],
        out_specs=pl.BlockSpec((BS, E), lambda i: (0, 0)),
    )(x2, prep["wqkv"], prep["bqkv"], prep["wo"], prep["bo"], bias)
    return out.reshape(B, S, E)


# ---------------------------------------------------------------------------
# Pure-JAX reference (mirrors the PyTorch forward exactly)
# ---------------------------------------------------------------------------
def multihead_attention_encoder_ref(x, params, num_heads):
    B, S, Din = x.shape
    E = params["wo"].shape[0]
    Hd = E // num_heads
    qkv = x @ params["wqkv"].T + params["bqkv"]                       # (B, S, 3E)
    qkv = qkv.reshape(B, S, num_heads, 3 * Hd).transpose(0, 2, 1, 3)  # (B, H, S, 3Hd)
    q, k, v = jnp.split(qkv, 3, axis=-1)
    attn = jnp.einsum("bhqd,bhkd->bhqk", q, k) / (E ** 0.5)
    attn = jax.nn.softmax(attn, axis=-1)                              # dropout: eval -> id
    out = jnp.einsum("bhqk,bhkd->bhqd", attn, v)
    out = out.transpose(0, 2, 1, 3).reshape(B, S, E)
    return out @ params["wo"].T + params["bo"]


if __name__ == "__main__":
    # Small shapes consistent with the module: batch=2, seq=8, input_dim=embed_dim=32, 4 heads.
    B, S, Din, E, H = 2, 8, 32, 32, 4

    key = jax.random.PRNGKey(0)
    ks = jax.random.split(key, 5)
    params = {
        "wqkv": 0.1 * jax.random.normal(ks[0], (3 * E, Din), jnp.float32),
        "bqkv": 0.1 * jax.random.normal(ks[1], (3 * E,), jnp.float32),
        "wo":   0.1 * jax.random.normal(ks[2], (E, E), jnp.float32),
        "bo":   0.1 * jax.random.normal(ks[3], (E,), jnp.float32),
    }
    x = jax.random.normal(ks[4], (B, S, Din), jnp.float32)

    prep = prepare_params(params, H)   # one-time (module-init) weight rearrangement

    y = jax.block_until_ready(multihead_attention_encoder(x, prep, H))
    y_ref = jax.block_until_ready(multihead_attention_encoder_ref(x, params, H))

    assert y.shape == (B, S, E), y.shape
    assert jnp.allclose(y, y_ref, atol=1e-4, rtol=1e-4), float(jnp.max(jnp.abs(y - y_ref)))
    print("KERNEL_OK")
</pallas_src>

<mosaic_0001>
module attributes {stable_mosaic.version = 11 : i64} {
  func.func @_mha_encoder_kernel(%arg0: i32, %arg1: memref<16x32xf32, #tpu.memory_space<vmem>>, %arg2: memref<32x96xf32, #tpu.memory_space<vmem>>, %arg3: memref<1x96xf32, #tpu.memory_space<vmem>>, %arg4: memref<32x32xf32, #tpu.memory_space<vmem>>, %arg5: memref<1x32xf32, #tpu.memory_space<vmem>>, %arg6: memref<16x16xf32, #tpu.memory_space<vmem>>, %arg7: memref<16x32xf32, #tpu.memory_space<vmem>>) attributes {dimension_semantics = [#tpu.dimension_semantics<arbitrary>], iteration_bounds = array<i64: 1>, scalar_prefetch = 0 : i64, scratch_operands = 0 : i64, tpu.core_type = #tpu.core_type<tc>, window_params = [{pipeline_mode = #tpu.pipeline_mode<synchronous>, transform_indices = @transform_0, window_bounds = array<i64: 16, 32>}, {pipeline_mode = #tpu.pipeline_mode<synchronous>, transform_indices = @transform_1, window_bounds = array<i64: 32, 96>}, {pipeline_mode = #tpu.pipeline_mode<synchronous>, transform_indices = @transform_2, window_bounds = array<i64: 1, 96>}, {pipeline_mode = #tpu.pipeline_mode<synchronous>, transform_indices = @transform_3, window_bounds = array<i64: 32, 32>}, {pipeline_mode = #tpu.pipeline_mode<synchronous>, transform_indices = @transform_4, window_bounds = array<i64: 1, 32>}, {pipeline_mode = #tpu.pipeline_mode<synchronous>, transform_indices = @transform_5, window_bounds = array<i64: 16, 16>}, {pipeline_mode = #tpu.pipeline_mode<synchronous>, transform_indices = @transform_6, window_bounds = array<i64: 16, 32>}]} {
    %c0 = arith.constant 0 : index
    %c0_0 = arith.constant 0 : index
    %0 = vector.load %arg1[%c0, %c0_0] : memref<16x32xf32, #tpu.memory_space<vmem>>, vector<16x32xf32>
    %c0_1 = arith.constant 0 : index
    %c0_2 = arith.constant 0 : index
    %1 = vector.load %arg6[%c0_1, %c0_2] : memref<16x16xf32, #tpu.memory_space<vmem>>, vector<16x16xf32>
    %c0_3 = arith.constant 0 : index
    %c0_4 = arith.constant 0 : index
    %2 = vector.load %arg4[%c0_3, %c0_4] : memref<32x32xf32, #tpu.memory_space<vmem>>, vector<32x32xf32>
    %c0_5 = arith.constant 0 : index
    %c0_6 = arith.constant 0 : index
    %3 = vector.load %arg2[%c0_5, %c0_6] : memref<32x96xf32, #tpu.memory_space<vmem>>, vector<32x96xf32>
    %cst = arith.constant dense<0.000000e+00> : vector<16x96xf32>
    %4 = tpu.matmul %0, %3, %cst {dimension_numbers = #tpu.dot_dimension_numbers<[1], [0], [0], [1], [0, 0, 1, 1], [], []>} : vector<16x32xf32>, vector<32x96xf32>, vector<16x96xf32> -> vector<16x96xf32>
    %c0_7 = arith.constant 0 : index
    %c0_8 = arith.constant 0 : index
    %5 = vector.load %arg3[%c0_7, %c0_8] : memref<1x96xf32, #tpu.memory_space<vmem>>, vector<1x96xf32>
    %6 = vector.broadcast %5 : vector<1x96xf32> to vector<16x96xf32>
    %7 = arith.addf %4, %6 : vector<16x96xf32>
    %cst_9 = arith.constant 0.000000e+00 : f32
    %8 = vector.broadcast %cst_9 : f32 to vector<16x32xf32>
    %9 = vector.extract_strided_slice %7 {offsets = [0, 0], sizes = [16, 8], strides = [1, 1]} : vector<16x96xf32> to vector<16x8xf32>
    %10 = vector.extract_strided_slice %7 {offsets = [0, 32], sizes = [16, 8], strides = [1, 1]} : vector<16x96xf32> to vector<16x8xf32>
    %11 = vector.extract_strided_slice %7 {offsets = [0, 64], sizes = [16, 8], strides = [1, 1]} : vector<16x96xf32> to vector<16x8xf32>
    %cst_10 = arith.constant dense<0.000000e+00> : vector<16x16xf32>
    %12 = tpu.matmul %9, %10, %cst_10 {dimension_numbers = #tpu.dot_dimension_numbers<[1], [1], [0], [0], [0, 0, 1, 0], [], []>} : vector<16x8xf32>, vector<16x8xf32>, vector<16x16xf32> -> vector<16x16xf32>
    %cst_11 = arith.constant 0.176776692 : f32
    %13 = vector.broadcast %cst_11 : f32 to vector<16x16xf32>
    %14 = arith.mulf %12, %13 : vector<16x16xf32>
    %15 = arith.addf %14, %1 : vector<16x16xf32>
    %cst_12 = arith.constant dense<0xFF800000> : vector<16xf32>
    %16 = vector.multi_reduction <maximumf>, %15, %cst_12 [1] : vector<16x16xf32> to vector<16xf32>
    %17 = vector.shape_cast %16 : vector<16xf32> to vector<16x1xf32>
    %18 = vector.broadcast %17 : vector<16x1xf32> to vector<16x16xf32>
    %19 = arith.subf %15, %18 : vector<16x16xf32>
    %20 = math.exp %19 : vector<16x16xf32>
    %cst_13 = arith.constant dense<0.000000e+00> : vector<16xf32>
    %21 = vector.multi_reduction <add>, %20, %cst_13 [1] : vector<16x16xf32> to vector<16xf32>
    %22 = vector.shape_cast %21 : vector<16xf32> to vector<16x1xf32>
    %23 = tpu.reciprocal %22 : vector<16x1xf32> -> vector<16x1xf32>
    %24 = vector.broadcast %23 : vector<16x1xf32> to vector<16x16xf32>
    %25 = arith.mulf %20, %24 : vector<16x16xf32>
    %cst_14 = arith.constant dense<0.000000e+00> : vector<16x8xf32>
    %26 = tpu.matmul %25, %11, %cst_14 {dimension_numbers = #tpu.dot_dimension_numbers<[1], [0], [0], [1], [0, 0, 1, 1], [], []>} : vector<16x16xf32>, vector<16x8xf32>, vector<16x8xf32> -> vector<16x8xf32>
    %27 = vector.extract_strided_slice %2 {offsets = [0, 0], sizes = [8, 32], strides = [1, 1]} : vector<32x32xf32> to vector<8x32xf32>
    %cst_15 = arith.constant dense<0.000000e+00> : vector<16x32xf32>
    %28 = tpu.matmul %26, %27, %cst_15 {dimension_numbers = #tpu.dot_dimension_numbers<[1], [0], [0], [1], [0, 0, 1, 1], [], []>} : vector<16x8xf32>, vector<8x32xf32>, vector<16x32xf32> -> vector<16x32xf32>
    %29 = arith.addf %8, %28 : vector<16x32xf32>
    %30 = vector.extract_strided_slice %7 {offsets = [0, 8], sizes = [16, 8], strides = [1, 1]} : vector<16x96xf32> to vector<16x8xf32>
    %31 = vector.extract_strided_slice %7 {offsets = [0, 40], sizes = [16, 8], strides = [1, 1]} : vector<16x96xf32> to vector<16x8xf32>
    %32 = vector.extract_strided_slice %7 {offsets = [0, 72], sizes = [16, 8], strides = [1, 1]} : vector<16x96xf32> to vector<16x8xf32>
    %cst_16 = arith.constant dense<0.000000e+00> : vector<16x16xf32>
    %33 = tpu.matmul %30, %31, %cst_16 {dimension_numbers = #tpu.dot_dimension_numbers<[1], [1], [0], [0], [0, 0, 1, 0], [], []>} : vector<16x8xf32>, vector<16x8xf32>, vector<16x16xf32> -> vector<16x16xf32>
    %cst_17 = arith.constant 0.176776692 : f32
    %34 = vector.broadcast %cst_17 : f32 to vector<16x16xf32>
    %35 = arith.mulf %33, %34 : vector<16x16xf32>
    %36 = arith.addf %35, %1 : vector<16x16xf32>
    %cst_18 = arith.constant dense<0xFF800000> : vector<16xf32>
    %37 = vector.multi_reduction <maximumf>, %36, %cst_18 [1] : vector<16x16xf32> to vector<16xf32>
    %38 = vector.shape_cast %37 : vector<16xf32> to vector<16x1xf32>
    %39 = vector.broadcast %38 : vector<16x1xf32> to vector<16x16xf32>
    %40 = arith.subf %36, %39 : vector<16x16xf32>
    %41 = math.exp %40 : vector<16x16xf32>
    %cst_19 = arith.constant dense<0.000000e+00> : vector<16xf32>
    %42 = vector.multi_reduction <add>, %41, %cst_19 [1] : vector<16x16xf32> to vector<16xf32>
    %43 = vector.shape_cast %42 : vector<16xf32> to vector<16x1xf32>
    %44 = tpu.reciprocal %43 : vector<16x1xf32> -> vector<16x1xf32>
    %45 = vector.broadcast %44 : vector<16x1xf32> to vector<16x16xf32>
    %46 = arith.mulf %41, %45 : vector<16x16xf32>
    %cst_20 = arith.constant dense<0.000000e+00> : vector<16x8xf32>
    %47 = tpu.matmul %46, %32, %cst_20 {dimension_numbers = #tpu.dot_dimension_numbers<[1], [0], [0], [1], [0, 0, 1, 1], [], []>} : vector<16x16xf32>, vector<16x8xf32>, vector<16x8xf32> -> vector<16x8xf32>
    %48 = vector.extract_strided_slice %2 {offsets = [8, 0], sizes = [8, 32], strides = [1, 1]} : vector<32x32xf32> to vector<8x32xf32>
    %cst_21 = arith.constant dense<0.000000e+00> : vector<16x32xf32>
    %49 = tpu.matmul %47, %48, %cst_21 {dimension_numbers = #tpu.dot_dimension_numbers<[1], [0], [0], [1], [0, 0, 1, 1], [], []>} : vector<16x8xf32>, vector<8x32xf32>, vector<16x32xf32> -> vector<16x32xf32>
    %50 = arith.addf %29, %49 : vector<16x32xf32>
    %51 = vector.extract_strided_slice %7 {offsets = [0, 16], sizes = [16, 8], strides = [1, 1]} : vector<16x96xf32> to vector<16x8xf32>
    %52 = vector.extract_strided_slice %7 {offsets = [0, 48], sizes = [16, 8], strides = [1, 1]} : vector<16x96xf32> to vector<16x8xf32>
    %53 = vector.extract_strided_slice %7 {offsets = [0, 80], sizes = [16, 8], strides = [1, 1]} : vector<16x96xf32> to vector<16x8xf32>
    %cst_22 = arith.constant dense<0.000000e+00> : vector<16x16xf32>
    %54 = tpu.matmul %51, %52, %cst_22 {dimension_numbers = #tpu.dot_dimension_numbers<[1], [1], [0], [0], [0, 0, 1, 0], [], []>} : vector<16x8xf32>, vector<16x8xf32>, vector<16x16xf32> -> vector<16x16xf32>
    %cst_23 = arith.constant 0.176776692 : f32
    %55 = vector.broadcast %cst_23 : f32 to vector<16x16xf32>
    %56 = arith.mulf %54, %55 : vector<16x16xf32>
    %57 = arith.addf %56, %1 : vector<16x16xf32>
    %cst_24 = arith.constant dense<0xFF800000> : vector<16xf32>
    %58 = vector.multi_reduction <maximumf>, %57, %cst_24 [1] : vector<16x16xf32> to vector<16xf32>
    %59 = vector.shape_cast %58 : vector<16xf32> to vector<16x1xf32>
    %60 = vector.broadcast %59 : vector<16x1xf32> to vector<16x16xf32>
    %61 = arith.subf %57, %60 : vector<16x16xf32>
    %62 = math.exp %61 : vector<16x16xf32>
    %cst_25 = arith.constant dense<0.000000e+00> : vector<16xf32>
    %63 = vector.multi_reduction <add>, %62, %cst_25 [1] : vector<16x16xf32> to vector<16xf32>
    %64 = vector.shape_cast %63 : vector<16xf32> to vector<16x1xf32>
    %65 = tpu.reciprocal %64 : vector<16x1xf32> -> vector<16x1xf32>
    %66 = vector.broadcast %65 : vector<16x1xf32> to vector<16x16xf32>
    %67 = arith.mulf %62, %66 : vector<16x16xf32>
    %cst_26 = arith.constant dense<0.000000e+00> : vector<16x8xf32>
    %68 = tpu.matmul %67, %53, %cst_26 {dimension_numbers = #tpu.dot_dimension_numbers<[1], [0], [0], [1], [0, 0, 1, 1], [], []>} : vector<16x16xf32>, vector<16x8xf32>, vector<16x8xf32> -> vector<16x8xf32>
    %69 = vector.extract_strided_slice %2 {offsets = [16, 0], sizes = [8, 32], strides = [1, 1]} : vector<32x32xf32> to vector<8x32xf32>
    %cst_27 = arith.constant dense<0.000000e+00> : vector<16x32xf32>
    %70 = tpu.matmul %68, %69, %cst_27 {dimension_numbers = #tpu.dot_dimension_numbers<[1], [0], [0], [1], [0, 0, 1, 1], [], []>} : vector<16x8xf32>, vector<8x32xf32>, vector<16x32xf32> -> vector<16x32xf32>
    %71 = arith.addf %50, %70 : vector<16x32xf32>
    %72 = vector.extract_strided_slice %7 {offsets = [0, 24], sizes = [16, 8], strides = [1, 1]} : vector<16x96xf32> to vector<16x8xf32>
    %73 = vector.extract_strided_slice %7 {offsets = [0, 56], sizes = [16, 8], strides = [1, 1]} : vector<16x96xf32> to vector<16x8xf32>
    %74 = vector.extract_strided_slice %7 {offsets = [0, 88], sizes = [16, 8], strides = [1, 1]} : vector<16x96xf32> to vector<16x8xf32>
    %cst_28 = arith.constant dense<0.000000e+00> : vector<16x16xf32>
    %75 = tpu.matmul %72, %73, %cst_28 {dimension_numbers = #tpu.dot_dimension_numbers<[1], [1], [0], [0], [0, 0, 1, 0], [], []>} : vector<16x8xf32>, vector<16x8xf32>, vector<16x16xf32> -> vector<16x16xf32>
    %cst_29 = arith.constant 0.176776692 : f32
    %76 = vector.broadcast %cst_29 : f32 to vector<16x16xf32>
    %77 = arith.mulf %75, %76 : vector<16x16xf32>
    %78 = arith.addf %77, %1 : vector<16x16xf32>
    %cst_30 = arith.constant dense<0xFF800000> : vector<16xf32>
    %79 = vector.multi_reduction <maximumf>, %78, %cst_30 [1] : vector<16x16xf32> to vector<16xf32>
    %80 = vector.shape_cast %79 : vector<16xf32> to vector<16x1xf32>
    %81 = vector.broadcast %80 : vector<16x1xf32> to vector<16x16xf32>
    %82 = arith.subf %78, %81 : vector<16x16xf32>
    %83 = math.exp %82 : vector<16x16xf32>
    %cst_31 = arith.constant dense<0.000000e+00> : vector<16xf32>
    %84 = vector.multi_reduction <add>, %83, %cst_31 [1] : vector<16x16xf32> to vector<16xf32>
    %85 = vector.shape_cast %84 : vector<16xf32> to vector<16x1xf32>
    %86 = tpu.reciprocal %85 : vector<16x1xf32> -> vector<16x1xf32>
    %87 = vector.broadcast %86 : vector<16x1xf32> to vector<16x16xf32>
    %88 = arith.mulf %83, %87 : vector<16x16xf32>
    %cst_32 = arith.constant dense<0.000000e+00> : vector<16x8xf32>
    %89 = tpu.matmul %88, %74, %cst_32 {dimension_numbers = #tpu.dot_dimension_numbers<[1], [0], [0], [1], [0, 0, 1, 1], [], []>} : vector<16x16xf32>, vector<16x8xf32>, vector<16x8xf32> -> vector<16x8xf32>
    %90 = vector.extract_strided_slice %2 {offsets = [24, 0], sizes = [8, 32], strides = [1, 1]} : vector<32x32xf32> to vector<8x32xf32>
    %cst_33 = arith.constant dense<0.000000e+00> : vector<16x32xf32>
    %91 = tpu.matmul %89, %90, %cst_33 {dimension_numbers = #tpu.dot_dimension_numbers<[1], [0], [0], [1], [0, 0, 1, 1], [], []>} : vector<16x8xf32>, vector<8x32xf32>, vector<16x32xf32> -> vector<16x32xf32>
    %92 = arith.addf %71, %91 : vector<16x32xf32>
    %c0_34 = arith.constant 0 : index
    %c0_35 = arith.constant 0 : index
    %93 = vector.load %arg5[%c0_34, %c0_35] : memref<1x32xf32, #tpu.memory_space<vmem>>, vector<1x32xf32>
    %94 = vector.broadcast %93 : vector<1x32xf32> to vector<16x32xf32>
    %95 = arith.addf %92, %94 : vector<16x32xf32>
    %c0_36 = arith.constant 0 : index
    %c0_37 = arith.constant 0 : index
    %96 = vector.load %arg7[%c0_36, %c0_37] : memref<16x32xf32, #tpu.memory_space<vmem>>, vector<16x32xf32>
    tpu.vector_store %arg7[%c0_36, %c0_37], %95 {strides = array<i32>} : memref<16x32xf32, #tpu.memory_space<vmem>>, vector<16x32xf32>,
    return
  }
  func.func @transform_0(%arg0: i32) -> (i32, i32) {
    %c0_i32 = arith.constant 0 : i32
    %c0_i32_0 = arith.constant 0 : i32
    %c0_i32_1 = arith.constant 0 : i32
    return %c0_i32, %c0_i32_0 : i32, i32
  }
  func.func @transform_1(%arg0: i32) -> (i32, i32) {
    %c0_i32 = arith.constant 0 : i32
    %c0_i32_0 = arith.constant 0 : i32
    %c0_i32_1 = arith.constant 0 : i32
    return %c0_i32, %c0_i32_0 : i32, i32
  }
  func.func @transform_2(%arg0: i32) -> (i32, i32) {
    %c0_i32 = arith.constant 0 : i32
    %c0_i32_0 = arith.constant 0 : i32
    %c0_i32_1 = arith.constant 0 : i32
    return %c0_i32, %c0_i32_0 : i32, i32
  }
  func.func @transform_3(%arg0: i32) -> (i32, i32) {
    %c0_i32 = arith.constant 0 : i32
    %c0_i32_0 = arith.constant 0 : i32
    %c0_i32_1 = arith.constant 0 : i32
    return %c0_i32, %c0_i32_0 : i32, i32
  }
  func.func @transform_4(%arg0: i32) -> (i32, i32) {
    %c0_i32 = arith.constant 0 : i32
    %c0_i32_0 = arith.constant 0 : i32
    %c0_i32_1 = arith.constant 0 : i32
    return %c0_i32, %c0_i32_0 : i32, i32
  }
  func.func @transform_5(%arg0: i32) -> (i32, i32) {
    %c0_i32 = arith.constant 0 : i32
    %c0_i32_0 = arith.constant 0 : i32
    %c0_i32_1 = arith.constant 0 : i32
    return %c0_i32, %c0_i32_0 : i32, i32
  }
  func.func @transform_6(%arg0: i32) -> (i32, i32) {
    %c0_i32 = arith.constant 0 : i32
    %c0_i32_0 = arith.constant 0 : i32
    %c0_i32_1 = arith.constant 0 : i32
    return %c0_i32, %c0_i32_0 : i32, i32
  }
}

</mosaic_0001>

<bundles_post_ra>
// kernel: tpu_custom_call.1
= control target key start
LH: loop header
LB: loop body
LE: loop exit
PB: predicated region body
PF: predicated region fallthrough
CT: control target
= control target key end

     0   :  { %11 = vsyncpa [#allocation3], 0  ;;  %s1882_s0 = inlined_call_operand.hbm [shape: f32[16,32], index: 0, kind: input, shape index: {}]   ;;  %s1883_s1 = inlined_call_operand.hbm [shape: f32[32,96], index: 1, kind: input, shape index: {}]   ;;  %s1884_s2 = inlined_call_operand.vmem [shape: f32[1,96], index: 2, kind: input, shape index: {}]   ;;  %s1885_s3 = inlined_call_operand.hbm [shape: f32[32,32], index: 3, kind: input, shape index: {}]   ;;  %s1886_s4 = inlined_call_operand.vmem [shape: f32[1,32], index: 4, kind: input, shape index: {}]   ;;  %s1887_s5 = inlined_call_operand.hbm [shape: f32[16,16], index: 5, kind: input, shape index: {}]   ;;  %s1888_s6 = inlined_call_operand.hbm [shape: f32[16,32], index: 6, kind: output, shape index: {}]  }
   0x1   :  { %12 = vsyncpa [#allocation6], 0 }
   0x2   :  { %13 = vsyncpa [#allocation9], 0 }
   0x3   :  { %14 = vsyncpa [#allocation4], 0  ;;  %s1685_s21 = smov [#allocation5]   ;;  %s1686_s23 = smov [#allocation2]  }
   0x4   :  { %s32_s22 = sshll.u32 %s1685_s21, 4  ;;  %s20_s24 = sshll.u32 %s1686_s23, 4  ;;  %s33_s22 = int_to_ptr.vmem [resolvable:$true] %s32_s22  ;;  %s21_s24 = int_to_ptr.vmem [resolvable:$true] %s20_s24 }
   0x5   :  { %s1585_s25 = scalar_lea.vmem %s33_s22, 512  ;;  %p1590_p1 = scmp.lt.s32.totalorder %s33_s22, %s33_s22 }
   0x6   :  { %p1586_p0 = scmp.ne.s32.totalorder %s33_s22, %s1585_s25  ;;  %p1591_p2 = scmp.lt.s32.totalorder %s1585_s25, %s1585_s25 }
   0x8   :  { %p1592_p3 = por %p1591_p2, %p1590_p1 }
   0xa   :  { %p1593_p4 = pnand %p1592_p3, %p1586_p0 }
   0xc   :  { %1596 = shalt.err (!%p1593_p4)
}
   0xd   :  { %s1687_s26 = smov 128   ;;  %s1688_s27 = smov 8  }
   0xe   :  { %38 = dma.hbm_to_vmem [thread:$0]  %s1883_s1, 512, %s33_s22, [#allocation6], %s1687_s26, %s1687_s26, %s1688_s27  }
   0xf   :  { %s1605_s30 = scalar_lea.vmem %s21_s24, 256  ;;  %p1610_p6 = scmp.lt.s32.totalorder %s21_s24, %s21_s24 }
  0x10   :  { %p1606_p5 = scmp.ne.s32.totalorder %s21_s24, %s1605_s30  ;;  %p1611_p7 = scmp.lt.s32.totalorder %s1605_s30, %s1605_s30 }
  0x12   :  { %p1612_p8 = por %p1611_p7, %p1610_p6 }
  0x14   :  { %p1613_p9 = pnand %p1612_p8, %p1606_p5 }
  0x16   :  { %1616 = shalt.err (!%p1613_p9)
}
  0x17   :  { %26 = dma.hbm_to_vmem [thread:$0]  %s1882_s0, 256, %s21_s24, [#allocation3], %s1687_s26, %s1687_s26, %s1688_s27  }
  0x18   :  { %s1689_s9 = smov [#allocation7]   ;;  %s1690_s11 = smov [#allocation8]  }
  0x19   :  { %s46_s10 = sshll.u32 %s1689_s9, 4  ;;  %s60_s12 = sshll.u32 %s1690_s11, 4  ;;  %s47_s10 = int_to_ptr.vmem [resolvable:$true] %s46_s10  ;;  %s61_s12 = int_to_ptr.vmem [resolvable:$true] %s60_s12 }
  0x1a   :  { %s1625_s1 = scalar_lea.vmem %s47_s10, 512  ;;  %p1630_p11 = scmp.lt.s32.totalorder %s47_s10, %s47_s10 }
  0x1b   :  { %p1626_p10 = scmp.ne.s32.totalorder %s47_s10, %s1625_s1  ;;  %p1631_p12 = scmp.lt.s32.totalorder %s1625_s1, %s1625_s1 }
  0x1d   :  { %p1632_p13 = por %p1631_p12, %p1630_p11 }
  0x1f   :  { %p1633_p0 = pnand %p1632_p13, %p1626_p10 }
  0x21   :  { %1636 = shalt.err (!%p1633_p0)
}
  0x22   :  { %52 = dma.hbm_to_vmem [thread:$0]  %s1885_s3, 512, %s47_s10, [#allocation6], %s1687_s26, %s1687_s26, %s1688_s27  }
  0x23   :  { %s1645_s0 = scalar_lea.vmem %s61_s12, 256  ;;  %p1650_p2 = scmp.lt.s32.totalorder %s61_s12, %s61_s12 }
  0x24   :  { %p1646_p1 = scmp.ne.s32.totalorder %s61_s12, %s1645_s0  ;;  %p1651_p3 = scmp.lt.s32.totalorder %s1645_s0, %s1645_s0 }
  0x26   :  { %p1652_p4 = por %p1651_p3, %p1650_p2 }
  0x28   :  { %p1653_p5 = pnand %p1652_p4, %p1646_p1 }
  0x2a   :  { %1656 = shalt.err (!%p1653_p5)
}
  0x2b   :  { %66 = dma.hbm_to_vmem [thread:$0]  %s1887_s5, 256, %s61_s12, [#allocation9], %s1687_s26, %s1687_s26, %s1688_s27  }
  0x2c   :  { %1677 = dma.done.wait [#allocation3], 256  }
  0x2d   :  { %1678 = vsyncadd [#allocation3], 4294967040 }
  0x2e   :  { %1679 = dma.done.wait [#allocation6], 1024  }
  0x2f   :  { %1680 = vsyncadd [#allocation6], 4294966272 }
  0x30   :  { %1681 = dma.done.wait [#allocation9], 256  }
  0x31   :  { %1682 = vsyncadd [#allocation9], 4294967040  ;;  %vm98_vm0 = vcmask 261120   ;;  %v90_v0 = vld [vmem:[#allocation5 + $0x18] sm:$0xff]  ;;  %v89_v1 = vld [vmem:[#allocation5 + $0x10] sm:$0xff]  ;;  %vm186_vm1 = vcmask 64512  }
  0x32   :  { %1440 = vmatprep.subr.mxu0 %v90_v0  ;;  %v79_v2 = vld [vmem:[#allocation2] sm:$0xff]  ;;  %v88_v3 = vld [vmem:[#allocation5 + $0x8] sm:$0xff]  ;;  %v87_v4 = vld [vmem:[#allocation5] sm:$0xff]  ;;  %s1691_s17 = smov 88   ;;  %s1692_s18 = smov 96   ;;  %vm274_vm2 = vcmask 130048  }
  0x33   :  { %1441 = vmatpush3.msra.mxu0 %v90_v0  ;;  %1448 = vmatprep.mubr.msk.f32.mxu0 %vm98_vm0, %v79_v2  ;;  %v80_v5 = vld [vmem:[#allocation2 + $0x8] sm:$0xff]  ;;  %v1354_v6 = vld [vmem:[%s1884_s2] ss:$0 sm:$0xff]  ;;  %s1693_s2 = smov 120   ;;  %v1791_v18 = vld [vmem:[#allocation8 + $0x8] sm:$0xff]  ;;  %s1694_s19 = smov 64  }
  0x34   :  { %1442 = vmatprep.subr.mxu0 %v89_v1  ;;  %v1793_v21 = vld [vmem:[#allocation8] sm:$0xff]  ;;  %s1695_s20 = smov 56   ;;  %s1696_s21 = smov 80  }
  0x35   :  { %1443 = vmatpush3.msra.mxu0 %v89_v1  ;;  %s1697_s22 = smov 112   ;;  %s1698_s23 = smov 72  }
  0x36   :  { %1444 = vmatprep.subr.mxu0 %v88_v3  ;;  %s1699_s24 = smov 104   ;;  %s1700_s25 = smov 48  }
  0x37   :  { %1445 = vmatpush3.msra.mxu0 %v88_v3  ;;  %v84_v3 = vld [vmem:[#allocation7 + $0x8] sm:$0xff]  ;;  %s1701_s28 = smov 40   ;;  %s1702_s7 = smov [#allocation10]  }
  0x38   :  { %1446 = vmatprep.subr.mxu0 %v87_v4  ;;  %s1340_s8 = sshll.u32 %s1702_s7, 4  ;;  %s1341_s8 = int_to_ptr.vmem [resolvable:$true] %s1340_s8 }
  0x39   :  { %1447 = vmatpush3.msra.mxu0 %v87_v4  ;;  %s1657_s9 = scalar_lea.vmem %s1341_s8, 256  ;;  %p1662_p7 = scmp.lt.s32.totalorder %s1341_s8, %s1341_s8 }
  0x3a   :  { %1449 = vmatmul.mubr.msk.f32.vlgmr.msra.gmra.mxu0 %vm98_vm0, %v80_v5  ;;  %p1658_p6 = scmp.ne.s32.totalorder %s1341_s8, %s1657_s9  ;;  %p1663_p8 = scmp.lt.s32.totalorder %s1657_s9, %s1657_s9 }
  0x3c   :  { %p1664_p9 = por %p1663_p8, %p1662_p7 }
  0x3e   :  { %p1665_p10 = pnand %p1664_p9, %p1658_p6 }
  0xfa   :  { %v1450_v7 = vpop.f32.mrf.mxu0 }
  0xfb   :  { %v1767_v8 = vadd.f32 %v1450_v7, %v1354_v6 }
  0xfc   :  { %v171_v9 = vpop.f32.mrf.mxu0 }
  0xfd   :  { %v1769_v10 = vadd.f32 %v1354_v6, %v171_v9  ;;  %390 = vrot.lane.b32.xlu1 %v1767_v8, %s1691_s17  ;;  %184 = vrot.lane.b32.xlu0 %v1767_v8, %s1692_s18 }
  0xff   :  { %1455 = vmatprep.mubr.msk.f32.mxu1 %vm186_vm1, %v1769_v10 }
 0x101   :  { %388 = vrot.lane.b32.xlu1 %v1769_v10, %s1691_s17  ;;  %182 = vrot.lane.b32.xlu0 %v1769_v10, %s1692_s18 }
 0x105   :  { %386 = vrot.lane.b32.xlu1 %v1767_v8, %s1693_s2  ;;  %384 = vrot.lane.b32.xlu0 %v1769_v10, %s1693_s2 }
 0x16f   :  { %v185_v11 = vpop.permute.xlu0 %184  ;;  %v391_v12 = vpop.permute.xlu1 %390 }
 0x170   :  { %1451 = vmatprep.subr.msk.mxu1 %vm186_vm1, %v185_v11 }
 0x171   :  { %1452 = vmatpush3.xpose.msk.msra.mxu1 %vm186_vm1, %v185_v11  ;;  %v83_v11 = vld [vmem:[#allocation7] sm:$0xff] }
 0x173   :  { %v183_v13 = vpop.permute.xlu0 %182  ;;  %v389_v15 = vpop.permute.xlu1 %388 }
 0x174   :  { %1453 = vmatprep.subr.msk.mxu1 %vm186_vm1, %v183_v13 }
 0x175   :  { %1454 = vmatpush3.xpose.msk.msra.mxu1 %vm186_vm1, %v183_v13 }
 0x176   :  { %1465 = vmatprep.subr.msk.mxu1 %vm186_vm1, %v391_v12 }
 0x177   :  { %v385_v14 = vpop.permute.xlu0 %384  ;;  %v387_v16 = vpop.permute.xlu1 %386 }
 0x178   :  { %1456 = vmatmul.mubr.msk.f32.vlgmr.msra.gmra.mxu1 %vm186_vm1, %v1767_v8 }
 0x179   :  { %1466 = vmatpush3.xpose.msk.msra.mxu1 %vm186_vm1, %v391_v12  ;;  %1469 = vmatprep.mubr.msk.f32.mxu1 %vm186_vm1, %v385_v14 }
 0x17a   :  { %1467 = vmatprep.subr.msk.mxu1 %vm186_vm1, %v389_v15 }
 0x17d   :  { %1468 = vmatpush3.xpose.msk.msra.mxu1 %vm186_vm1, %v389_v15 }
 0x17e   :  { %1484 = vmatprep.subr.mxu1 %v83_v11 }
 0x180   :  { %1470 = vmatmul.mubr.msk.f32.vlgmr.msra.gmra.mxu1 %vm186_vm1, %v387_v16 }
 0x181   :  { %1485 = vmatpush3.msra.mxu1 %v83_v11 }
 0x238   :  { %v1457_v17 = vpop.f32.mrf.mxu1 }
 0x239   :  { %v271_v19 = vmul.f32 0.17677669, %v1457_v17 }
 0x23a   :  { %v261_v20 = vpop.f32.mrf.mxu1 }
 0x23b   :  { %v270_v22 = vmul.f32 0.17677669, %v261_v20  ;;  %v273_v23 = vadd.f32 %v271_v19, %v1791_v18 }
 0x23d   :  { %v278_v24 = vsel %vm274_vm2, %v273_v23, -inf  ;;  %v272_v25 = vadd.f32 %v270_v22, %v1793_v21 }
 0x23e   :  { %279 = vmax.xlane.f32.xlu1 %v278_v24 }
 0x23f   :  { %v275_v26 = vsel %vm274_vm2, %v272_v25, -inf }
 0x240   :  { %v1471_v27 = vpop.f32.mrf.mxu1  ;;  %276 = vmax.xlane.f32.xlu0 %v275_v26 }
 0x241   :  { %v476_v29 = vmul.f32 0.17677669, %v1471_v27 }
 0x242   :  { %v466_v28 = vpop.f32.mrf.mxu1 }
 0x243   :  { %v475_v30 = vmul.f32 0.17677669, %v466_v28  ;;  %v478_v33 = vadd.f32 %v476_v29, %v1791_v18 }
 0x245   :  { %v477_v31 = vadd.f32 %v475_v30, %v1793_v21  ;;  %v482_v34 = vsel %vm274_vm2, %v478_v33, -inf }
 0x247   :  { %v479_v32 = vsel %vm274_vm2, %v477_v31, -inf }
 0x248   :  { %480 = vmax.xlane.f32.xlu0 %v479_v32 }
 0x24c   :  { %483 = vmax.xlane.f32.xlu0 %v482_v34 }
 0x24f   :  { %299 = vrot.lane.b32.xlu1 %v1767_v8, %s1694_s19 }
 0x2c7   :  { %v280_v35 = vpop.xlane.xlu1 %279 }
 0x2c8   :  { %v282_v36 = vsub.f32 %v273_v23, %v280_v35 }
 0x2c9   :  { %v277_v37 = vpop.xlane.xlu0 %276 }
 0x2ca   :  { %v285_v38 = vmul.f32 1.442695, %v282_v36  ;;  %v281_v39 = vsub.f32 %v272_v25, %v277_v37 }
 0x2cb   :  { %v300_v40 = vpop.permute.xlu1 %299 }
 0x2cc   :  { %1545 = vpow2.f32 %v285_v38  ;;  %v283_v41 = vmul.f32 1.442695, %v281_v39  ;;  %1458 = vmatprep.subr.mxu0 %v300_v40 }
 0x2cd   :  { %1459 = vmatpush3.msra.mxu0 %v300_v40 }
 0x2ce   :  { %1547 = vpow2.f32 %v283_v41 }
 0x2d1   :  { %v481_v42 = vpop.xlane.xlu0 %480 }
 0x2d2   :  { %v485_v52 = vsub.f32 %v477_v31, %v481_v42 }
 0x2d4   :  { %v487_v53 = vmul.f32 1.442695, %v485_v52 }
 0x2d5   :  { %v484_v43 = vpop.xlane.xlu0 %483 }
 0x2d6   :  { %v486_v44 = vsub.f32 %v478_v33, %v484_v43 }
 0x2d8   :  { %v489_v45 = vmul.f32 1.442695, %v486_v44 }
 0x2d9   :  { %v1546_v46 = vpop.eup %1545 }
 0x2da   :  { %1549 = vpow2.f32 %v489_v45  ;;  %v290_v47 = vsel %vm274_vm2, %v1546_v46, 0.0 }
 0x2db   :  { %v1548_v48 = vpop.eup %1547  ;;  %291 = vadd.xlane.f32.xlu0 %v290_v47  ;;  %1551 = vpow2.f32 %v487_v53 }
 0x2dc   :  { %v287_v49 = vsel %vm274_vm2, %v1548_v48, 0.0 }
 0x2dd   :  { %288 = vadd.xlane.f32.xlu1 %v287_v49 }
 0x2e7   :  { %v1550_v50 = vpop.eup %1549 }
 0x2e8   :  { %v494_v51 = vsel %vm274_vm2, %v1550_v50, 0.0  ;;  %v1552_v54 = vpop.eup %1551 }
 0x2e9   :  { %495 = vadd.xlane.f32.xlu0 %v494_v51  ;;  %v491_v55 = vsel %vm274_vm2, %v1552_v54, 0.0 }
 0x2ee   :  { %503 = vrot.lane.b32.xlu1 %v1767_v8, %s1695_s20 }
 0x2ff   :  { %297 = vrot.lane.b32.xlu0 %v1769_v10, %s1694_s19 }
 0x303   :  { %756 = vrot.lane.b32.xlu0 %v1767_v8, %s1696_s21 }
 0x307   :  { %750 = vrot.lane.b32.xlu0 %v1769_v10, %s1697_s22 }
 0x30b   :  { %1043 = vrot.lane.b32.xlu0 %v1767_v8, %s1698_s23 }
 0x30f   :  { %1037 = vrot.lane.b32.xlu0 %v1769_v10, %s1699_s24 }
 0x312   :  { %492 = vadd.xlane.f32.xlu1 %v491_v55 }
 0x323   :  { %501 = vrot.lane.b32.xlu1 %v1769_v10, %s1695_s20 }
 0x327   :  { %754 = vrot.lane.b32.xlu1 %v1769_v10, %s1696_s21 }
 0x32b   :  { %752 = vrot.lane.b32.xlu1 %v1767_v8, %s1697_s22 }
 0x32f   :  { %1041 = vrot.lane.b32.xlu1 %v1769_v10, %s1698_s23 }
 0x333   :  { %1039 = vrot.lane.b32.xlu1 %v1767_v8, %s1699_s24 }
 0x364   :  { %v292_v56 = vpop.xlane.xlu0 %291 }
 0x365   :  { %1553 = vrcp.f32 %v292_v56 }
 0x366   :  { %v289_v57 = vpop.xlane.xlu1 %288 }
 0x367   :  { %1555 = vrcp.f32 %v289_v57 }
 0x36a   :  { %v504_v0 = vpop.permute.xlu1 %503 }
 0x372   :  { %v496_v58 = vpop.xlane.xlu0 %495  ;;  %v1554_v59 = vpop.eup %1553 }
 0x373   :  { %v296_v63 = vmul.f32 %v1554_v59, %v1546_v46  ;;  %1557 = vrcp.f32 %v496_v58 }
 0x374   :  { %v1556_v60 = vpop.eup %1555 }
 0x375   :  { %v295_v61 = vmul.f32 %v1556_v60, %v1548_v48 }
 0x376   :  { %v298_v62 = vpop.permute.xlu0 %297 }
 0x377   :  { %1460 = vmatprep.subr.mxu0 %v298_v62  ;;  %1462 = vmatprep.mubr.msk.f32.mxu0 %vm274_vm2, %v295_v61 }
 0x378   :  { %1461 = vmatpush3.msra.mxu0 %v298_v62 }
 0x379   :  { %1463 = vmatmul.mubr.msk.f32.vlgmr.msra.gmra.mxu0 %vm274_vm2, %v296_v63  ;;  %1472 = vmatprep.subr.mxu0 %v504_v0  ;;  %v85_v63 = vld [vmem:[#allocation7 + $0x10] sm:$0xff] }
 0x37a   :  { %1473 = vmatpush3.msra.mxu0 %v504_v0  ;;  %v757_v9 = vpop.permute.xlu0 %756 }
 0x37e   :  { %v751_v14 = vpop.permute.xlu0 %750 }
 0x380   :  { %v1558_v4 = vpop.eup %1557 }
 0x381   :  { %v500_v7 = vmul.f32 %v1558_v4, %v1550_v50 }
 0x382   :  { %v1044_v19 = vpop.permute.xlu0 %1043 }
 0x386   :  { %v1038_v22 = vpop.permute.xlu0 %1037 }
 0x39b   :  { %v493_v1 = vpop.xlane.xlu1 %492 }
 0x39c   :  { %1559 = vrcp.f32 %v493_v1 }
 0x39f   :  { %v502_v2 = vpop.permute.xlu1 %501 }
 0x3a0   :  { %1474 = vmatprep.subr.mxu0 %v502_v2 }
 0x3a1   :  { %1475 = vmatpush3.msra.mxu0 %v502_v2 }
 0x3a2   :  { %1479 = vmatprep.subr.mxu0 %v84_v3 }
 0x3a3   :  { %v755_v16 = vpop.permute.xlu1 %754 }
 0x3a7   :  { %v753_v20 = vpop.permute.xlu1 %752 }
 0x3a9   :  { %v1560_v5 = vpop.eup %1559 }
 0x3aa   :  { %v499_v6 = vmul.f32 %v1560_v5, %v1552_v54 }
 0x3ab   :  { %v1042_v23 = vpop.permute.xlu1 %1041 }
 0x3ac   :  { %1476 = vmatprep.mubr.msk.f32.mxu0 %vm274_vm2, %v499_v6 }
 0x3ad   :  { %1477 = vmatmul.mubr.msk.f32.vlgmr.msra.gmra.mxu0 %vm274_vm2, %v500_v7 }
 0x3ae   :  { %1480 = vmatpush3.msra.mxu0 %v84_v3 }
 0x3af   :  { %1489 = vmatprep.subr.msk.mxu0 %vm186_vm1, %v757_v9  ;;  %v1040_v24 = vpop.permute.xlu1 %1039 }
 0x439   :  { %v1464_v12 = vpop.f32.mrf.mxu0 }
 0x43b   :  { %v375_v13 = vpop.f32.mrf.mxu0 }
 0x43c   :  { %1486 = vmatprep.mubr.msk.f32.mxu1 %vm186_vm1, %v375_v13 }
 0x43d   :  { %1487 = vmatmul.mubr.msk.f32.vlgmr.msra.gmra.mxu1 %vm186_vm1, %v1464_v12 }
 0x46d   :  { %v1478_v15 = vpop.f32.mrf.mxu0 }
 0x46f   :  { %v579_v17 = vpop.f32.mrf.mxu0 }
 0x470   :  { %1481 = vmatprep.mubr.msk.f32.mxu0 %vm186_vm1, %v579_v17 }
 0x471   :  { %1482 = vmatmul.mubr.msk.f32.vlgmr.msra.gmra.mxu0 %vm186_vm1, %v1478_v15 }
 0x472   :  { %1490 = vmatpush3.xpose.msk.msra.mxu0 %vm186_vm1, %v757_v9  ;;  %1493 = vmatprep.mubr.msk.f32.mxu0 %vm186_vm1, %v751_v14 }
 0x473   :  { %1491 = vmatprep.subr.msk.mxu0 %vm186_vm1, %v755_v16 }
 0x476   :  { %1492 = vmatpush3.xpose.msk.msra.mxu0 %vm186_vm1, %v755_v16 }
 0x477   :  { %1508 = vmatprep.subr.msk.mxu0 %vm186_vm1, %v1044_v19 }
 0x479   :  { %1494 = vmatmul.mubr.msk.f32.vlgmr.msra.gmra.mxu0 %vm186_vm1, %v753_v20  ;;  %v86_v20 = vld [vmem:[#allocation7 + $0x18] sm:$0xff] }
 0x47a   :  { %1509 = vmatpush3.xpose.msk.msra.mxu0 %vm186_vm1, %v1044_v19  ;;  %1512 = vmatprep.mubr.msk.f32.mxu0 %vm186_vm1, %v1038_v22 }
 0x47b   :  { %1510 = vmatprep.subr.msk.mxu0 %vm186_vm1, %v1042_v23 }
 0x47e   :  { %1511 = vmatpush3.xpose.msk.msra.mxu0 %vm186_vm1, %v1042_v23 }
 0x481   :  { %1513 = vmatmul.mubr.msk.f32.vlgmr.msra.gmra.mxu0 %vm186_vm1, %v1040_v24 }
 0x4fd   :  { %v1488_v25 = vpop.f32.mrf.mxu1 }
 0x4ff   :  { %v741_v11 = vpop.f32.mrf.mxu1 }
 0x531   :  { %v1483_v26 = vpop.f32.mrf.mxu0 }
 0x532   :  { %v1841_v27 = vadd.f32 %v1488_v25, %v1483_v26 }
 0x533   :  { %v1843_v28 = vpop.f32.mrf.mxu0 }
 0x534   :  { %v742_v23 = vadd.f32 %v741_v11, %v1843_v28 }
 0x539   :  { %v1495_v29 = vpop.f32.mrf.mxu0 }
 0x53a   :  { %v842_v30 = vmul.f32 0.17677669, %v1495_v29 }
 0x53b   :  { %v832_v31 = vpop.f32.mrf.mxu0 }
 0x53c   :  { %v841_v32 = vmul.f32 0.17677669, %v832_v31  ;;  %v844_v33 = vadd.f32 %v842_v30, %v1791_v18 }
 0x53e   :  { %v848_v34 = vsel %vm274_vm2, %v844_v33, -inf  ;;  %v843_v35 = vadd.f32 %v841_v32, %v1793_v21  ;;  %v1389_v32 = vld [vmem:[%s1886_s4] ss:$0 sm:$0xff] }
 0x53f   :  { %849 = vmax.xlane.f32.xlu1 %v848_v34 }
 0x540   :  { %v845_v36 = vsel %vm274_vm2, %v843_v35, -inf }
 0x541   :  { %846 = vmax.xlane.f32.xlu0 %v845_v36  ;;  %v1514_v37 = vpop.f32.mrf.mxu0 }
 0x542   :  { %v1129_v55 = vmul.f32 0.17677669, %v1514_v37 }
 0x543   :  { %v1119_v38 = vpop.f32.mrf.mxu0 }
 0x544   :  { %v1128_v39 = vmul.f32 0.17677669, %v1119_v38  ;;  %v1131_v58 = vadd.f32 %v1129_v55, %v1791_v18 }
 0x546   :  { %v1130_v40 = vadd.f32 %v1128_v39, %v1793_v21  ;;  %v1135_v59 = vsel %vm274_vm2, %v1131_v58, -inf }
 0x548   :  { %v1132_v41 = vsel %vm274_vm2, %v1130_v40, -inf }
 0x550   :  { %869 = vrot.lane.b32.xlu1 %v1767_v8, %s1700_s25 }
 0x574   :  { %1133 = vmax.xlane.f32.xlu1 %v1132_v41 }
 0x5c8   :  { %v850_v42 = vpop.xlane.xlu1 %849 }
 0x5c9   :  { %v852_v43 = vsub.f32 %v844_v33, %v850_v42 }
 0x5ca   :  { %v847_v44 = vpop.xlane.xlu0 %846 }
 0x5cb   :  { %v855_v45 = vmul.f32 1.442695, %v852_v43  ;;  %v851_v46 = vsub.f32 %v843_v35, %v847_v44 }
 0x5cc   :  { %v870_v47 = vpop.permute.xlu1 %869 }
 0x5cd   :  { %1561 = vpow2.f32 %v855_v45  ;;  %v853_v48 = vmul.f32 1.442695, %v851_v46  ;;  %1496 = vmatprep.subr.mxu1 %v870_v47 }
 0x5ce   :  { %1497 = vmatpush3.msra.mxu1 %v870_v47 }
 0x5cf   :  { %1563 = vpow2.f32 %v853_v48 }
 0x5da   :  { %v1562_v49 = vpop.eup %1561 }
 0x5db   :  { %v860_v50 = vsel %vm274_vm2, %v1562_v49, 0.0 }
 0x5dc   :  { %v1564_v51 = vpop.eup %1563  ;;  %861 = vadd.xlane.f32.xlu0 %v860_v50 }
 0x5dd   :  { %v857_v21 = vsel %vm274_vm2, %v1564_v51, 0.0 }
 0x5e0   :  { %858 = vadd.xlane.f32.xlu0 %v857_v21 }
 0x5f6   :  { %867 = vrot.lane.b32.xlu0 %v1769_v10, %s1700_s25 }
 0x5fd   :  { %v1134_v52 = vpop.xlane.xlu1 %1133 }
 0x5fe   :  { %v1138_v53 = vsub.f32 %v1130_v40, %v1134_v52 }
 0x600   :  { %v1140_v54 = vmul.f32 1.442695, %v1138_v53 }
 0x602   :  { %1565 = vpow2.f32 %v1140_v54 }
 0x60f   :  { %v1566_v56 = vpop.eup %1565 }
 0x610   :  { %v1144_v57 = vsel %vm274_vm2, %v1566_v56, 0.0 }
 0x611   :  { %1145 = vadd.xlane.f32.xlu1 %v1144_v57 }
 0x615   :  { %1136 = vmax.xlane.f32.xlu0 %v1135_v59 }
 0x622   :  { %1156 = vrot.lane.b32.xlu1 %v1767_v8, %s1701_s28 }
 0x665   :  { %v862_v60 = vpop.xlane.xlu0 %861 }
 0x666   :  { %1567 = vrcp.f32 %v862_v60 }
 0x669   :  { %v859_v61 = vpop.xlane.xlu0 %858 }
 0x66a   :  { %1569 = vrcp.f32 %v859_v61 }
 0x66d   :  { %v868_v62 = vpop.permute.xlu0 %867 }
 0x66e   :  { %1498 = vmatprep.subr.mxu1 %v868_v62 }
 0x66f   :  { %1499 = vmatpush3.msra.mxu1 %v868_v62 }
 0x670   :  { %1503 = vmatprep.subr.mxu1 %v85_v63 }
 0x673   :  { %v1568_v0 = vpop.eup %1567 }
 0x674   :  { %v866_v18 = vmul.f32 %v1568_v0, %v1562_v49 }
 0x677   :  { %v1570_v1 = vpop.eup %1569 }
 0x678   :  { %v865_v2 = vmul.f32 %v1570_v1, %v1564_v51 }
 0x67a   :  { %1500 = vmatprep.mubr.msk.f32.mxu1 %vm274_vm2, %v865_v2 }
 0x67b   :  { %1501 = vmatmul.mubr.msk.f32.vlgmr.msra.gmra.mxu1 %vm274_vm2, %v866_v18 }
 0x67c   :  { %1504 = vmatpush3.msra.mxu1 %v85_v63 }
 0x69a   :  { %v1146_v3 = vpop.xlane.xlu1 %1145 }
 0x69e   :  { %v1157_v8 = vpop.permute.xlu1 %1156  ;;  %v1137_v4 = vpop.xlane.xlu0 %1136 }
 0x69f   :  { %v1139_v5 = vsub.f32 %v1131_v58, %v1137_v4  ;;  %1515 = vmatprep.subr.mxu1 %v1157_v8 }
 0x6a1   :  { %v1142_v6 = vmul.f32 1.442695, %v1139_v5 }
 0x6a3   :  { %1571 = vpow2.f32 %v1142_v6 }
 0x6a4   :  { %1573 = vrcp.f32 %v1146_v3 }
 0x6b0   :  { %v1572_v7 = vpop.eup %1571 }
 0x6b1   :  { %v1147_v9 = vsel %vm274_vm2, %v1572_v7, 0.0  ;;  %v1574_v12 = vpop.eup %1573 }
 0x6b2   :  { %1148 = vadd.xlane.f32.xlu0 %v1147_v9  ;;  %v1152_v16 = vmul.f32 %v1574_v12, %v1566_v56 }
 0x6c8   :  { %1154 = vrot.lane.b32.xlu0 %v1769_v10, %s1701_s28 }
 0x73b   :  { %v1502_v13 = vpop.f32.mrf.mxu1  ;;  %v1149_v14 = vpop.xlane.xlu0 %1148 }
 0x73c   :  { %1575 = vrcp.f32 %v1149_v14 }
 0x73d   :  { %v945_v15 = vpop.f32.mrf.mxu1 }
 0x73e   :  { %1505 = vmatprep.mubr.msk.f32.mxu1 %vm186_vm1, %v945_v15 }
 0x73f   :  { %1506 = vmatmul.mubr.msk.f32.vlgmr.msra.gmra.mxu1 %vm186_vm1, %v1502_v13  ;;  %v1155_v17 = vpop.permute.xlu0 %1154 }
 0x740   :  { %1516 = vmatpush3.msra.mxu1 %v1157_v8  ;;  %1519 = vmatprep.mubr.msk.f32.mxu1 %vm274_vm2, %v1152_v16 }
 0x741   :  { %1517 = vmatprep.subr.mxu1 %v1155_v17 }
 0x742   :  { %1518 = vmatpush3.msra.mxu1 %v1155_v17 }
 0x743   :  { %1522 = vmatprep.subr.mxu1 %v86_v20 }
 0x749   :  { %v1576_v19 = vpop.eup %1575 }
 0x74a   :  { %v1153_v10 = vmul.f32 %v1576_v19, %v1572_v7 }
 0x74c   :  { %1520 = vmatmul.mubr.msk.f32.vlgmr.msra.gmra.mxu1 %vm274_vm2, %v1153_v10 }
 0x74d   :  { %1523 = vmatpush3.msra.mxu1 %v86_v20 }
 0x7ff   :  { %v1507_v22 = vpop.f32.mrf.mxu1 }
 0x800   :  { %v1036_v24 = vadd.f32 %v1507_v22, %v1841_v27 }
 0x801   :  { %v1026_v25 = vpop.f32.mrf.mxu1 }
 0x802   :  { %v1035_v26 = vadd.f32 %v1026_v25, %v742_v23 }
 0x80c   :  { %v1521_v29 = vpop.f32.mrf.mxu1 }
 0x80e   :  { %v1232_v30 = vpop.f32.mrf.mxu1 }
 0x80f   :  { %1524 = vmatprep.mubr.msk.f32.mxu1 %vm186_vm1, %v1232_v30 }
 0x810   :  { %1525 = vmatmul.mubr.msk.f32.vlgmr.msra.gmra.mxu1 %vm186_vm1, %v1521_v29 }
 0x8d0   :  { %v1526_v31 = vpop.f32.mrf.mxu1 }
 0x8d1   :  { %v1323_v33 = vadd.f32 %v1526_v31, %v1036_v24 }
 0x8d2   :  { %v1313_v34 = vpop.f32.mrf.mxu1 }
 0x8d3   :  { %v1332_v28 = vadd.f32 %v1389_v32, %v1323_v33  ;;  %v1322_v35 = vadd.f32 %v1313_v34, %v1035_v26 }
 0x8d5   :  { %1334 = vst.msk [vmem:[#allocation10 + $0x8] sm:$0xff] %vm98_vm0, %v1332_v28  ;;  %v1331_v27 = vadd.f32 %v1389_v32, %v1322_v35 }
 0x8d7   :  { %1333 = vst.msk [vmem:[#allocation10] sm:$0xff] %vm98_vm0, %v1331_v27 }
 0x8d8   :  { %1668 = shalt.err (!%p1665_p10)
}
 0x8d9   :  { %1346 = dma.vmem_to_hbm [thread:$0]  %s1341_s8, 256, %s1888_s6, [#allocation4], %s1687_s26, %s1687_s26, %s1688_s27  }
 0x8da   :  { %1683 = dma.done.wait [#allocation4], 256  }
 0x8db   :  { %1684 = vsyncadd [#allocation4], 4294967040 }
 0x8dc   :  { %1350 = vsyncpa [#allocation3], 1 }
 0x8dd   :  { %1351 = vsyncpa [#allocation6], 1 }
 0x8de   :  { %1352 = vsyncpa [#allocation9], 1 }
 0x8df   :  { %1353 = vsyncpa [#allocation4], 1 }

</bundles_post_ra>
